<compile_context>
chip_gen: v6e
topology: v6e:2x2x1
jax: 0.10.0
libtpu: 0.0.40
codegen_flags: <defaults>
</compile_context>

<pallas_src>
import functools

import jax
import jax.numpy as jnp
from jax.experimental import pallas as pl
from jax.experimental.pallas import tpu as pltpu

SIGNAL_STEP = 8  # matches self.signal_step in the PyTorch module


def _pool_kernel(x_ref, b_ref, o_ref, *, n_cols, tail, f_tile, n_full, mask_rows):
    # x_ref: (1, F_TILE, N_CHUNK)       features on sublanes, node-chunk on lanes
    # b_ref: (N_CHUNK, N_OUT_TILE)      node-chunk on sublanes, output nodes on lanes
    # o_ref: (1, F_TILE, N_OUT_TILE)    resident accumulator across the chunk grid axis
    c = pl.program_id(3)
    is_first = c == 0
    is_last = c == pl.num_programs(3) - 1

    def column_product(l):
        col = x_ref[0, :, l:l + 1]      # (F_TILE, 1)      -> lane broadcast
        row = b_ref[l:l + 1, :]         # (1, N_OUT_TILE)  -> sublane broadcast
        return col * row                # outer product on the VPU

    # Seed the running max in-register on chunk 0 (column 0 is always valid), so we never
    # memset -inf to o_ref and immediately read it back. On later chunks, continue from o_ref.
    p0 = column_product(0)
    acc = jnp.where(is_first, p0, jnp.maximum(o_ref[0], p0))

    # Only needed when the last chunk is partial (N_in % N_CHUNK != 0); hoisted out of the loop.
    if tail < n_cols:
        neg_inf = jnp.full((o_ref.shape[1], o_ref.shape[2]), -jnp.inf, o_ref.dtype)

    for l in range(1, n_cols):          # static unroll -> static lane/sublane slices only
        p = column_product(l)
        if l >= tail:                   # static: columns past the valid tail of the LAST chunk
            p = jnp.where(is_last, neg_inf, p)
        acc = jnp.maximum(acc, p)

    if mask_rows:
        # Leftover signal_step feature rows (f >= n_full) must come out exactly 0 (torch.zeros).
        rows = jax.lax.broadcasted_iota(
            jnp.int32, (o_ref.shape[1], o_ref.shape[2]), 0) + pl.program_id(1) * f_tile
        acc = jnp.where(rows < n_full, acc, jnp.zeros_like(acc))

    o_ref[0] = acc


def pool_clique_to_line(x, incidence_matrix, *, f_tile=128, n_out_tile=128, n_chunk=256,
                        compute_dtype=jnp.float32):
    """x: (B, F, N_in); incidence_matrix: (N_in, N_out). Returns (B, F, N_out) float32.

    compute_dtype=jnp.bfloat16 enables the v6e/v7x fast path (~2x VPU throughput; the max is
    exact in bf16, only the per-element product is rounded). Keep float32 on v5e.
    """
    B, F, N_in = x.shape
    n_in_b, N_out = incidence_matrix.shape
    assert n_in_b == N_in

    n_full = (F // SIGNAL_STEP) * SIGNAL_STEP
    if n_full == 0:  # every feature row is "leftover" -> stays zero (torch.zeros init)
        return jnp.zeros((B, F, N_out), jnp.float32)

    x_c = x.astype(compute_dtype)
    b_c = incidence_matrix.astype(compute_dtype)

    # Tile sizes: use the full dim when it fits in one tile (block dim == array dim is always
    # legal), otherwise an aligned tile (8-multiple sublane / 128-multiple lane). Partial
    # boundary blocks are handled in-kernel / by Pallas OOB-write dropping.
    assert f_tile % 8 == 0 and n_out_tile % 128 == 0 and n_chunk % 128 == 0
    F_TILE = F if F <= f_tile else f_tile
    N_OUT_TILE = N_out if N_out <= n_out_tile else n_out_tile
    N_CHUNK = N_in if N_in <= n_chunk else n_chunk

    n_f = pl.cdiv(F, F_TILE)
    n_m = pl.cdiv(N_out, N_OUT_TILE)
    n_c = pl.cdiv(N_in, N_CHUNK)
    tail = N_in - (n_c - 1) * N_CHUNK        # valid columns in the last chunk (>= 1)

    kernel = functools.partial(
        _pool_kernel, n_cols=N_CHUNK, tail=tail, f_tile=F_TILE,
        n_full=n_full, mask_rows=(n_full < F))

    out = pl.pallas_call(
        kernel,
        out_shape=jax.ShapeDtypeStruct((B, F, N_out), compute_dtype),
        grid_spec=pltpu.PrefetchScalarGridSpec(
            num_scalar_prefetch=0,
            grid=(B, n_f, n_m, n_c),
            in_specs=[
                # x tiled directly over (batch, feature tile, node chunk): no wrapper transpose.
                pl.BlockSpec((1, F_TILE, N_CHUNK), lambda b, f, m, c: (b, f, c)),
                # incidence matrix tiled over (node chunk, output-node tile).
                pl.BlockSpec((N_CHUNK, N_OUT_TILE), lambda b, f, m, c: (c, m)),
            ],
            out_specs=pl.BlockSpec((1, F_TILE, N_OUT_TILE), lambda b, f, m, c: (b, f, m)),
        ),
        compiler_params=pltpu.CompilerParams(
            dimension_semantics=("parallel", "parallel", "parallel", "arbitrary"),
        ),
    )(x_c, b_c)

    return out.astype(jnp.float32)


def _reference(x, incidence_matrix):
    """Pure-JAX reference mirroring the PyTorch forward loop exactly."""
    B, F, N_in = x.shape
    N_out = incidence_matrix.shape[1]
    bt = incidence_matrix.T.astype(jnp.float32)
    v = jnp.zeros((B, F, N_out), jnp.float32)
    n_full = (F // SIGNAL_STEP) * SIGNAL_STEP
    if n_full > 0:
        vv = jnp.max(x[:, :n_full, None, :].astype(jnp.float32) * bt[None, None, :, :], axis=-1)
        v = v.at[:, :n_full, :].set(vv)
    return v


if __name__ == "__main__":
    key = jax.random.PRNGKey(0)
    k1, k2, k3 = jax.random.split(key, 3)

    # --- test 1: cycle-graph incidence matrix (deterministic), tiny shapes ---
    batch, dim_features, n_in, n_out = 2, 16, 16, 16
    nodes = jnp.arange(n_in)[:, None]
    edges = jnp.arange(n_out)[None, :]
    incidence = ((nodes == edges) | (nodes == (edges + 1) % n_in)).astype(jnp.float32)
    x1 = jax.random.normal(k1, (batch, dim_features, n_in), dtype=jnp.float32)

    out1 = jax.block_until_ready(pool_clique_to_line(x1, incidence))
    ref1 = _reference(x1, incidence)
    assert out1.shape == (batch, dim_features, n_out)
    assert out1.dtype == jnp.float32
    assert jnp.allclose(out1, ref1, atol=1e-6), "mismatch vs reference (test 1)"

    # --- test 2: ragged sizes + leftover (signal_step) features + dense signed B
    #     (exercises partial tiles on every axis, tail-column masking, leftover-row zeroing) ---
    batch2, feat2, n_in2, n_out2 = 2, 20, 12, 10
    x2 = jax.random.normal(k2, (batch2, feat2, n_in2), dtype=jnp.float32)
    b2 = jax.random.normal(k3, (n_in2, n_out2), dtype=jnp.float32)

    out2 = jax.block_until_ready(pool_clique_to_line(x2, b2))
    ref2 = _reference(x2, b2)
    assert out2.shape == (batch2, feat2, n_out2)
    assert out2.dtype == jnp.float32
    assert jnp.allclose(out2, ref2, atol=1e-6), "mismatch vs reference (test 2)"
    assert jnp.all(out2[:, (feat2 // SIGNAL_STEP) * SIGNAL_STEP:, :] == 0.0), "leftover rows != 0"

    # --- test 3: bf16 fast path (v6e/v7x), loose tolerance (products rounded to bf16) ---
    out3 = jax.block_until_ready(
        pool_clique_to_line(x1, incidence, compute_dtype=jnp.bfloat16))
    assert out3.shape == (batch, dim_features, n_out)
    assert out3.dtype == jnp.float32
    assert jnp.allclose(out3, ref1, atol=5e-2, rtol=5e-2), "mismatch vs reference (test 3, bf16)"

    print("KERNEL_OK")
</pallas_src>

<mosaic_0001>
module attributes {stable_mosaic.version = 11 : i64} {
  func.func @_pool_kernel(%arg0: i32, %arg1: i32, %arg2: i32, %arg3: i32, %arg4: memref<1x16x16xf32, #tpu.memory_space<vmem>>, %arg5: memref<16x16xf32, #tpu.memory_space<vmem>>, %arg6: memref<1x16x16xf32, #tpu.memory_space<vmem>>) attributes {dimension_semantics = [#tpu.dimension_semantics<parallel>, #tpu.dimension_semantics<parallel>, #tpu.dimension_semantics<parallel>, #tpu.dimension_semantics<arbitrary>], iteration_bounds = array<i64: 2, 1, 1, 1>, scalar_prefetch = 0 : i64, scratch_operands = 0 : i64, tpu.core_type = #tpu.core_type<tc>, window_params = [{transform_indices = @transform_0, window_bounds = array<i64: 1, 16, 16>}, {transform_indices = @transform_1, window_bounds = array<i64: 16, 16>}, {transform_indices = @transform_2, window_bounds = array<i64: 1, 16, 16>}]} {
    %c0_i32 = arith.constant 0 : i32
    %0 = arith.cmpi eq, %arg3, %c0_i32 : i32
    %c0 = arith.constant 0 : index
    %c0_0 = arith.constant 0 : index
    %c0_1 = arith.constant 0 : index
    %1 = vector.load %arg4[%c0, %c0_0, %c0_1] : memref<1x16x16xf32, #tpu.memory_space<vmem>>, vector<1x16x1xf32>
    %2 = vector.shape_cast %1 : vector<1x16x1xf32> to vector<16x1xf32>
    %c0_2 = arith.constant 0 : index
    %c0_3 = arith.constant 0 : index
    %3 = vector.load %arg5[%c0_2, %c0_3] : memref<16x16xf32, #tpu.memory_space<vmem>>, vector<1x16xf32>
    %4 = vector.broadcast %2 : vector<16x1xf32> to vector<16x16xf32>
    %5 = vector.broadcast %3 : vector<1x16xf32> to vector<16x16xf32>
    %6 = arith.mulf %4, %5 : vector<16x16xf32>
    %c0_4 = arith.constant 0 : index
    %c0_5 = arith.constant 0 : index
    %c0_6 = arith.constant 0 : index
    %7 = vector.load %arg6[%c0_4, %c0_5, %c0_6] : memref<1x16x16xf32, #tpu.memory_space<vmem>>, vector<1x16x16xf32>
    %8 = vector.shape_cast %7 : vector<1x16x16xf32> to vector<16x16xf32>
    %9 = arith.maximumf %8, %6 : vector<16x16xf32>
    %10 = arith.select %0, %6, %9 : vector<16x16xf32>
    %c0_7 = arith.constant 0 : index
    %c0_8 = arith.constant 0 : index
    %c1 = arith.constant 1 : index
    %11 = vector.load %arg4[%c0_7, %c0_8, %c1] : memref<1x16x16xf32, #tpu.memory_space<vmem>>, vector<1x16x1xf32>
    %12 = vector.shape_cast %11 : vector<1x16x1xf32> to vector<16x1xf32>
    %c1_9 = arith.constant 1 : index
    %c0_10 = arith.constant 0 : index
    %13 = vector.load %arg5[%c1_9, %c0_10] : memref<16x16xf32, #tpu.memory_space<vmem>>, vector<1x16xf32>
    %14 = vector.broadcast %12 : vector<16x1xf32> to vector<16x16xf32>
    %15 = vector.broadcast %13 : vector<1x16xf32> to vector<16x16xf32>
    %16 = arith.mulf %14, %15 : vector<16x16xf32>
    %17 = arith.maximumf %10, %16 : vector<16x16xf32>
    %c0_11 = arith.constant 0 : index
    %c0_12 = arith.constant 0 : index
    %c2 = arith.constant 2 : index
    %18 = vector.load %arg4[%c0_11, %c0_12, %c2] : memref<1x16x16xf32, #tpu.memory_space<vmem>>, vector<1x16x1xf32>
    %19 = vector.shape_cast %18 : vector<1x16x1xf32> to vector<16x1xf32>
    %c2_13 = arith.constant 2 : index
    %c0_14 = arith.constant 0 : index
    %20 = vector.load %arg5[%c2_13, %c0_14] : memref<16x16xf32, #tpu.memory_space<vmem>>, vector<1x16xf32>
    %21 = vector.broadcast %19 : vector<16x1xf32> to vector<16x16xf32>
    %22 = vector.broadcast %20 : vector<1x16xf32> to vector<16x16xf32>
    %23 = arith.mulf %21, %22 : vector<16x16xf32>
    %24 = arith.maximumf %17, %23 : vector<16x16xf32>
    %c0_15 = arith.constant 0 : index
    %c0_16 = arith.constant 0 : index
    %c3 = arith.constant 3 : index
    %25 = vector.load %arg4[%c0_15, %c0_16, %c3] : memref<1x16x16xf32, #tpu.memory_space<vmem>>, vector<1x16x1xf32>
    %26 = vector.shape_cast %25 : vector<1x16x1xf32> to vector<16x1xf32>
    %c3_17 = arith.constant 3 : index
    %c0_18 = arith.constant 0 : index
    %27 = vector.load %arg5[%c3_17, %c0_18] : memref<16x16xf32, #tpu.memory_space<vmem>>, vector<1x16xf32>
    %28 = vector.broadcast %26 : vector<16x1xf32> to vector<16x16xf32>
    %29 = vector.broadcast %27 : vector<1x16xf32> to vector<16x16xf32>
    %30 = arith.mulf %28, %29 : vector<16x16xf32>
    %31 = arith.maximumf %24, %30 : vector<16x16xf32>
    %c0_19 = arith.constant 0 : index
    %c0_20 = arith.constant 0 : index
    %c4 = arith.constant 4 : index
    %32 = vector.load %arg4[%c0_19, %c0_20, %c4] : memref<1x16x16xf32, #tpu.memory_space<vmem>>, vector<1x16x1xf32>
    %33 = vector.shape_cast %32 : vector<1x16x1xf32> to vector<16x1xf32>
    %c4_21 = arith.constant 4 : index
    %c0_22 = arith.constant 0 : index
    %34 = vector.load %arg5[%c4_21, %c0_22] : memref<16x16xf32, #tpu.memory_space<vmem>>, vector<1x16xf32>
    %35 = vector.broadcast %33 : vector<16x1xf32> to vector<16x16xf32>
    %36 = vector.broadcast %34 : vector<1x16xf32> to vector<16x16xf32>
    %37 = arith.mulf %35, %36 : vector<16x16xf32>
    %38 = arith.maximumf %31, %37 : vector<16x16xf32>
    %c0_23 = arith.constant 0 : index
    %c0_24 = arith.constant 0 : index
    %c5 = arith.constant 5 : index
    %39 = vector.load %arg4[%c0_23, %c0_24, %c5] : memref<1x16x16xf32, #tpu.memory_space<vmem>>, vector<1x16x1xf32>
    %40 = vector.shape_cast %39 : vector<1x16x1xf32> to vector<16x1xf32>
    %c5_25 = arith.constant 5 : index
    %c0_26 = arith.constant 0 : index
    %41 = vector.load %arg5[%c5_25, %c0_26] : memref<16x16xf32, #tpu.memory_space<vmem>>, vector<1x16xf32>
    %42 = vector.broadcast %40 : vector<16x1xf32> to vector<16x16xf32>
    %43 = vector.broadcast %41 : vector<1x16xf32> to vector<16x16xf32>
    %44 = arith.mulf %42, %43 : vector<16x16xf32>
    %45 = arith.maximumf %38, %44 : vector<16x16xf32>
    %c0_27 = arith.constant 0 : index
    %c0_28 = arith.constant 0 : index
    %c6 = arith.constant 6 : index
    %46 = vector.load %arg4[%c0_27, %c0_28, %c6] : memref<1x16x16xf32, #tpu.memory_space<vmem>>, vector<1x16x1xf32>
    %47 = vector.shape_cast %46 : vector<1x16x1xf32> to vector<16x1xf32>
    %c6_29 = arith.constant 6 : index
    %c0_30 = arith.constant 0 : index
    %48 = vector.load %arg5[%c6_29, %c0_30] : memref<16x16xf32, #tpu.memory_space<vmem>>, vector<1x16xf32>
    %49 = vector.broadcast %47 : vector<16x1xf32> to vector<16x16xf32>
    %50 = vector.broadcast %48 : vector<1x16xf32> to vector<16x16xf32>
    %51 = arith.mulf %49, %50 : vector<16x16xf32>
    %52 = arith.maximumf %45, %51 : vector<16x16xf32>
    %c0_31 = arith.constant 0 : index
    %c0_32 = arith.constant 0 : index
    %c7 = arith.constant 7 : index
    %53 = vector.load %arg4[%c0_31, %c0_32, %c7] : memref<1x16x16xf32, #tpu.memory_space<vmem>>, vector<1x16x1xf32>
    %54 = vector.shape_cast %53 : vector<1x16x1xf32> to vector<16x1xf32>
    %c7_33 = arith.constant 7 : index
    %c0_34 = arith.constant 0 : index
    %55 = vector.load %arg5[%c7_33, %c0_34] : memref<16x16xf32, #tpu.memory_space<vmem>>, vector<1x16xf32>
    %56 = vector.broadcast %54 : vector<16x1xf32> to vector<16x16xf32>
    %57 = vector.broadcast %55 : vector<1x16xf32> to vector<16x16xf32>
    %58 = arith.mulf %56, %57 : vector<16x16xf32>
    %59 = arith.maximumf %52, %58 : vector<16x16xf32>
    %c0_35 = arith.constant 0 : index
    %c0_36 = arith.constant 0 : index
    %c8 = arith.constant 8 : index
    %60 = vector.load %arg4[%c0_35, %c0_36, %c8] : memref<1x16x16xf32, #tpu.memory_space<vmem>>, vector<1x16x1xf32>
    %61 = vector.shape_cast %60 : vector<1x16x1xf32> to vector<16x1xf32>
    %c8_37 = arith.constant 8 : index
    %c0_38 = arith.constant 0 : index
    %62 = vector.load %arg5[%c8_37, %c0_38] : memref<16x16xf32, #tpu.memory_space<vmem>>, vector<1x16xf32>
    %63 = vector.broadcast %61 : vector<16x1xf32> to vector<16x16xf32>
    %64 = vector.broadcast %62 : vector<1x16xf32> to vector<16x16xf32>
    %65 = arith.mulf %63, %64 : vector<16x16xf32>
    %66 = arith.maximumf %59, %65 : vector<16x16xf32>
    %c0_39 = arith.constant 0 : index
    %c0_40 = arith.constant 0 : index
    %c9 = arith.constant 9 : index
    %67 = vector.load %arg4[%c0_39, %c0_40, %c9] : memref<1x16x16xf32, #tpu.memory_space<vmem>>, vector<1x16x1xf32>
    %68 = vector.shape_cast %67 : vector<1x16x1xf32> to vector<16x1xf32>
    %c9_41 = arith.constant 9 : index
    %c0_42 = arith.constant 0 : index
    %69 = vector.load %arg5[%c9_41, %c0_42] : memref<16x16xf32, #tpu.memory_space<vmem>>, vector<1x16xf32>
    %70 = vector.broadcast %68 : vector<16x1xf32> to vector<16x16xf32>
    %71 = vector.broadcast %69 : vector<1x16xf32> to vector<16x16xf32>
    %72 = arith.mulf %70, %71 : vector<16x16xf32>
    %73 = arith.maximumf %66, %72 : vector<16x16xf32>
    %c0_43 = arith.constant 0 : index
    %c0_44 = arith.constant 0 : index
    %c10 = arith.constant 10 : index
    %74 = vector.load %arg4[%c0_43, %c0_44, %c10] : memref<1x16x16xf32, #tpu.memory_space<vmem>>, vector<1x16x1xf32>
    %75 = vector.shape_cast %74 : vector<1x16x1xf32> to vector<16x1xf32>
    %c10_45 = arith.constant 10 : index
    %c0_46 = arith.constant 0 : index
    %76 = vector.load %arg5[%c10_45, %c0_46] : memref<16x16xf32, #tpu.memory_space<vmem>>, vector<1x16xf32>
    %77 = vector.broadcast %75 : vector<16x1xf32> to vector<16x16xf32>
    %78 = vector.broadcast %76 : vector<1x16xf32> to vector<16x16xf32>
    %79 = arith.mulf %77, %78 : vector<16x16xf32>
    %80 = arith.maximumf %73, %79 : vector<16x16xf32>
    %c0_47 = arith.constant 0 : index
    %c0_48 = arith.constant 0 : index
    %c11 = arith.constant 11 : index
    %81 = vector.load %arg4[%c0_47, %c0_48, %c11] : memref<1x16x16xf32, #tpu.memory_space<vmem>>, vector<1x16x1xf32>
    %82 = vector.shape_cast %81 : vector<1x16x1xf32> to vector<16x1xf32>
    %c11_49 = arith.constant 11 : index
    %c0_50 = arith.constant 0 : index
    %83 = vector.load %arg5[%c11_49, %c0_50] : memref<16x16xf32, #tpu.memory_space<vmem>>, vector<1x16xf32>
    %84 = vector.broadcast %82 : vector<16x1xf32> to vector<16x16xf32>
    %85 = vector.broadcast %83 : vector<1x16xf32> to vector<16x16xf32>
    %86 = arith.mulf %84, %85 : vector<16x16xf32>
    %87 = arith.maximumf %80, %86 : vector<16x16xf32>
    %c0_51 = arith.constant 0 : index
    %c0_52 = arith.constant 0 : index
    %c12 = arith.constant 12 : index
    %88 = vector.load %arg4[%c0_51, %c0_52, %c12] : memref<1x16x16xf32, #tpu.memory_space<vmem>>, vector<1x16x1xf32>
    %89 = vector.shape_cast %88 : vector<1x16x1xf32> to vector<16x1xf32>
    %c12_53 = arith.constant 12 : index
    %c0_54 = arith.constant 0 : index
    %90 = vector.load %arg5[%c12_53, %c0_54] : memref<16x16xf32, #tpu.memory_space<vmem>>, vector<1x16xf32>
    %91 = vector.broadcast %89 : vector<16x1xf32> to vector<16x16xf32>
    %92 = vector.broadcast %90 : vector<1x16xf32> to vector<16x16xf32>
    %93 = arith.mulf %91, %92 : vector<16x16xf32>
    %94 = arith.maximumf %87, %93 : vector<16x16xf32>
    %c0_55 = arith.constant 0 : index
    %c0_56 = arith.constant 0 : index
    %c13 = arith.constant 13 : index
    %95 = vector.load %arg4[%c0_55, %c0_56, %c13] : memref<1x16x16xf32, #tpu.memory_space<vmem>>, vector<1x16x1xf32>
    %96 = vector.shape_cast %95 : vector<1x16x1xf32> to vector<16x1xf32>
    %c13_57 = arith.constant 13 : index
    %c0_58 = arith.constant 0 : index
    %97 = vector.load %arg5[%c13_57, %c0_58] : memref<16x16xf32, #tpu.memory_space<vmem>>, vector<1x16xf32>
    %98 = vector.broadcast %96 : vector<16x1xf32> to vector<16x16xf32>
    %99 = vector.broadcast %97 : vector<1x16xf32> to vector<16x16xf32>
    %100 = arith.mulf %98, %99 : vector<16x16xf32>
    %101 = arith.maximumf %94, %100 : vector<16x16xf32>
    %c0_59 = arith.constant 0 : index
    %c0_60 = arith.constant 0 : index
    %c14 = arith.constant 14 : index
    %102 = vector.load %arg4[%c0_59, %c0_60, %c14] : memref<1x16x16xf32, #tpu.memory_space<vmem>>, vector<1x16x1xf32>
    %103 = vector.shape_cast %102 : vector<1x16x1xf32> to vector<16x1xf32>
    %c14_61 = arith.constant 14 : index
    %c0_62 = arith.constant 0 : index
    %104 = vector.load %arg5[%c14_61, %c0_62] : memref<16x16xf32, #tpu.memory_space<vmem>>, vector<1x16xf32>
    %105 = vector.broadcast %103 : vector<16x1xf32> to vector<16x16xf32>
    %106 = vector.broadcast %104 : vector<1x16xf32> to vector<16x16xf32>
    %107 = arith.mulf %105, %106 : vector<16x16xf32>
    %108 = arith.maximumf %101, %107 : vector<16x16xf32>
    %c0_63 = arith.constant 0 : index
    %c0_64 = arith.constant 0 : index
    %c15 = arith.constant 15 : index
    %109 = vector.load %arg4[%c0_63, %c0_64, %c15] : memref<1x16x16xf32, #tpu.memory_space<vmem>>, vector<1x16x1xf32>
    %110 = vector.shape_cast %109 : vector<1x16x1xf32> to vector<16x1xf32>
    %c15_65 = arith.constant 15 : index
    %c0_66 = arith.constant 0 : index
    %111 = vector.load %arg5[%c15_65, %c0_66] : memref<16x16xf32, #tpu.memory_space<vmem>>, vector<1x16xf32>
    %112 = vector.broadcast %110 : vector<16x1xf32> to vector<16x16xf32>
    %113 = vector.broadcast %111 : vector<1x16xf32> to vector<16x16xf32>
    %114 = arith.mulf %112, %113 : vector<16x16xf32>
    %115 = arith.maximumf %108, %114 : vector<16x16xf32>
    %c0_67 = arith.constant 0 : index
    %c0_68 = arith.constant 0 : index
    %c0_69 = arith.constant 0 : index
    %116 = vector.load %arg6[%c0_67, %c0_68, %c0_69] : memref<1x16x16xf32, #tpu.memory_space<vmem>>, vector<1x16x16xf32>
    %117 = vector.shape_cast %116 : vector<1x16x16xf32> to vector<16x16xf32>
    %118 = vector.shape_cast %115 : vector<16x16xf32> to vector<1x16x16xf32>
    tpu.vector_store %arg6[%c0_67, %c0_68, %c0_69], %118 {strides = array<i32>} : memref<1x16x16xf32, #tpu.memory_space<vmem>>, vector<1x16x16xf32>,
    return
  }
  func.func @transform_0(%arg0: i32, %arg1: i32, %arg2: i32, %arg3: i32) -> (i32, i32, i32) {
    %c0_i32 = arith.constant 0 : i32
    return %arg0, %arg1, %arg3 : i32, i32, i32
  }
  func.func @transform_1(%arg0: i32, %arg1: i32, %arg2: i32, %arg3: i32) -> (i32, i32) {
    %c0_i32 = arith.constant 0 : i32
    return %arg3, %arg2 : i32, i32
  }
  func.func @transform_2(%arg0: i32, %arg1: i32, %arg2: i32, %arg3: i32) -> (i32, i32, i32) {
    %c0_i32 = arith.constant 0 : i32
    return %arg0, %arg1, %arg2 : i32, i32, i32
  }
}

</mosaic_0001>

<bundles_post_ra>
// kernel: tpu_custom_call.1
= control target key start
LH: loop header
LB: loop body
LE: loop exit
PB: predicated region body
PF: predicated region fallthrough
CT: control target
= control target key end

     0   :  { %7 = vsyncpa [#allocation3], 0  ;;  %s1200_s0 = inlined_call_operand.hbm [shape: f32[2,16,16], index: 0, kind: input, shape index: {}]   ;;  %s1201_s1 = inlined_call_operand.hbm [shape: f32[16,16], index: 1, kind: input, shape index: {}]   ;;  %s1202_s2 = inlined_call_operand.hbm [shape: f32[2,16,16], index: 2, kind: output, shape index: {}]  }
   0x1   :  { %9 = vsyncpa [#allocation3 + $0x1], 0 }
   0x2   :  { %10 = vsyncpa [#allocation6], 0 }
   0x3   :  { %11 = vsyncpa [#allocation4], 0 }
   0x4   :  { %13 = vsyncpa [#allocation4 + $0x1], 0  ;;  %s973_s9 = smov 0   ;;  %s975_s10 = smov 0  }
   0x5   :  { %s977_s11 = smov 0   ;;  %s979_s12 = smov 0  }
   0x6   :  { %s981_s13 = smov 0   ;;  %s983_s14 = smov 0  }
   0x7 LB: > { %s641_s15 = sadd.s32 4294967295, %s933_s14   ;;  %s642_s16 = sadd.s32 4294967294, %s933_s14   ;;  %s933_s14 = sphi %s983_s14, %s19_s14   ;;  %s929_s13 = sphi %s981_s13, %s1222_s13   ;;  %s925_s12 = sphi %s979_s12, %s1221_s12   ;;  %s921_s11 = sphi %s977_s11, %s1220_s11   ;;  %s917_s10 = sphi %s975_s10, %s1219_s10   ;;  %s913_s9 = sphi %s973_s9, %s1218_s9  }
   0x8   : > { %p69_p0 = scmp.ne.s32.totalorder %s917_s10, %s913_s9  ;;  %p1007_p1 = scmp.eq.s32.totalorder %s641_s15, 0 }
   0x9   : > { %p1011_p2 = scmp.eq.s32.totalorder %s641_s15, 1  ;;  %p131_p3 = scmp.eq.s32.totalorder %s642_s16, 1 }
   0xa   : > { %p1017_p4 = por %p1007_p1, %p69_p0  ;;  %p643_p5 = scmp.ge.s32.totalorder %s933_s14, 1 }
   0xb   : > { %p1022_p6 = por %p131_p3, %p69_p0  ;;  %p138_p7 = scmp.lt.s32.totalorder %s933_s14, 3 }
   0xc   : > { %s1207_s19 = scalar_select %p1017_p4, 1, 0 }
   0xd   : > { %s1208_s20 = scalar_select %p1022_p6, 1, 0 }
   0xe   : > { %p1027_p8 = pnand %p643_p5, %p138_p7  ;;  %s935_s22 = smov [#allocation5]  }
   0xf   : > { %s154_s23 = sshll.u32 %s935_s22, 4  ;;  %s45_s25 = sadd.s32 1, %s929_s13  ;;  %s155_s23 = int_to_ptr.vmem [resolvable:$true] %s154_s23 }
  0x10   : > { %p684_p9 = pneg %p1027_p8  ;;  %s806_s26 = scalar_lea.vmem %s155_s23, 256 }
  0x11   : > { %p807_p13 = scmp.ne.s32.totalorder %s155_s23, %s806_s26  ;;  %p814_p5 = scmp.lt.s32.totalorder %s155_s23, %s155_s23 }
  0x12   : > { %p1036_p11 = pnand %p684_p9, %p1007_p1  ;;  %p815_p7 = scmp.lt.s32.totalorder %s806_s26, %s806_s26 }
  0x14   : > { %p797_p12 = pneg %p1036_p11  ;;  %p816_p6 = por %p815_p7, %p814_p5 }
  0x16   : > { %p809_p0 = pnand %p807_p13, %p797_p12 }
  0x18   : > { %p810_p3 = pneg %p809_p0 }
  0x1a   : > { %p817_p4 = pnand %p816_p6, %p810_p3 }
  0x1c   : > { %820 = shalt.err (!%p817_p4)
}
  0x1d   : > { %s1204_s27 = smov 128   ;;  %s937_s28 = smov 8  }
  0x1e   : > { %687 = dma.hbm_to_vmem [thread:$0]  (!%p1036_p11), %s1201_s1, 256, %s155_s23, [#allocation6], %s1204_s27, %s1204_s27, %s937_s28  }
  0x1f   : > { %p47_p4 = scmp.ge.s32.totalorder %s45_s25, 2  ;;  %s56_s3 = sadd.s32 1, %s921_s11 }
  0x20   : > { %p63_p6 = scmp.ne.s32.totalorder %s921_s11, %s917_s10  ;;  %p64_p9 = scmp.eq.s32.totalorder %s933_s14, 0 }
  0x21   : > { %s1224_s25 = smov (%p47_p4, %s45_s25), 0  ;;  %p697_p0 = scmp.lt.s32.totalorder %s933_s14, 2 }
  0x22   : > { %p1057_p12 = por %p64_p9, %p63_p6  ;;  %p1063_p13 = por %p1011_p2, %p63_p6 }
  0x23   : > { %s49_s6 = ssub.s32 %s929_s13, %s1224_s25  ;;  %s168_s7 = sand.u32 1, %s921_s11  }
  0x24   : > { %p54_p11 = scmp.eq.s32.totalorder %s49_s6, 0  ;;  %s646_s8 = sshll.u32 %s168_s7, 4 }
  0x25   : > { %s674_s16 = sshll.u32 %s929_s13, 8  ;;  %s172_s26 = scalar_lea.vmem [#allocation2], %s646_s8 }
  0x26   : > { %s1072_s15 = scalar_select %p54_p11, %s921_s11, %s56_s3  }
  0x27   : > { %s181_s24 = scalar_lea.hbm %s1200_s0, %s674_s16  ;;  %s182_s29 = sshll.u32 %s172_s26, 4  ;;  %s183_s29 = int_to_ptr.vmem [resolvable:$true] %s182_s29 }
  0x28   : > { %p1080_p2 = pnand %p697_p0, %p1057_p12  ;;  %s169_s30 = scalar_lea.sflag [#allocation3], %s168_s7 }
  0x29   : > { %s834_s6 = scalar_lea.vmem %s183_s29, 256  ;;  %s938_s3 = smov [#allocation2]  }
  0x2a   : > { %p823_p3 = pneg %p1080_p2  ;;  %p835_p5 = scmp.ne.s32.totalorder %s183_s29, %s834_s6 }
  0x2b   : > { %s839_s27 = sshll.u32 %s938_s3, 4  ;;  %s840_s27 = int_to_ptr.vmem [resolvable:$false] %s839_s27 }
  0x2c   : > { %p837_p7 = pnand %p835_p5, %p823_p3  ;;  %s841_s16 = scalar_lea.vmem %s840_s27, 512 }
  0x2d   : > { %p842_p6 = scmp.lt.s32.totalorder %s183_s29, %s840_s27  ;;  %p843_p9 = scmp.lt.s32.totalorder %s841_s16, %s834_s6 }
  0x2e   : > { %p838_p4 = pneg %p837_p7 }
  0x2f   : > { %p844_p11 = por %p843_p9, %p842_p6 }
  0x31   : > { %p845_p10 = pnand %p844_p11, %p838_p4 }
  0x33   : > { %848 = shalt.err (!%p845_p10)
}
  0x34   : > { %s1214_s4 = smov 128   ;;  %194 = sbr.rel (%p1027_p8) target bundleno = 294 (0x126), region = 28 }
  0x35   : > { %691 = dma.hbm_to_vmem [thread:$0]  (!%p1080_p2), %s181_s24, 256, %s183_s29, %s169_s30, %s1214_s4, %s1214_s4, %s937_s28  }
  0x36   : > { %s1094_s7 = sand.u32 (!%p1027_p8), 1, %s917_s10   ;;  %p1215_p10 = scmp.ne.s32.totalorder (!%p1027_p8), %s1207_s19, 0 }
  0x37   : > { %s650_s27 = sshll.u32 (!%p1027_p8), %s1094_s7, 4  ;;  %s197_s8 = scalar_lea.sflag (!%p1027_p8), [#allocation3], %s1094_s7 }
  0x38   : > { %s200_s22 = scalar_lea.vmem (!%p1027_p8), [#allocation2], %s650_s27 }
  0x39   : > { %900 = dma.done.wait (%p1215_p10), %s197_s8, 256  }
  0x3a   : > { %902 = vsyncadd (%p1215_p10), %s197_s8, 4294967040 }
  0x3b   : > { %904 = dma.done.wait (%p1007_p1), [#allocation6], 256  }
  0x3c   : > { %906 = vsyncadd (%p1007_p1), [#allocation6], 4294967040  ;;  %v939_v0 = vmov 1   ;;  %v940_v1 = vmov 0   ;;  %v1108_v2 = vld [vmem:[%s200_s22] sm:$0xff]  ;;  %v1112_v3 = vld [vmem:[%s200_s22 + $0x8] sm:$0xff] }
  0x3d   : > { %770 = vset.pattern.permute.xlu1 %v939_v0  ;;  %769 = vset.pattern.permute.xlu0 %v940_v1  ;;  %v941_v4 = vmov 2   ;;  %v942_v5 = vmov 3   ;;  %v943_v6 = vmov 4   ;;  %v944_v7 = vmov 5   ;;  %v654_v32 = vld [vmem:[#allocation5 + $0x1] ss:$0 sm:$0xff] }
  0x3e   : > { %259 = vperm.xlu1 %770, %v1108_v2   ;;  %234 = vperm.xlu0 %769, %v1108_v2   ;;  %v945_v8 = vmov 6   ;;  %v946_v9 = vmov 8   ;;  %v947_v10 = vmov 9   ;;  %v948_v11 = vmov 7   ;;  %v653_v33 = vld [vmem:[#allocation5] ss:$0 sm:$0xff] }
  0x3f   : > { %v949_v12 = vmov 11   ;;  %v950_v13 = vmov 12   ;;  %v951_v14 = vmov 14   ;;  %v952_v15 = vmov 15   ;;  %v655_v34 = vld [vmem:[#allocation5 + $0x2] ss:$0 sm:$0xff] }
  0x40   : > { %v953_v16 = vmov 10   ;;  %v954_v17 = vmov 13   ;;  %v656_v41 = vld [vmem:[#allocation5 + $0x3] ss:$0 sm:$0xff]  ;;  %v657_v47 = vld [vmem:[#allocation5 + $0x4] ss:$0 sm:$0xff] }
  0x41   : > { %v658_v55 = vld [vmem:[#allocation5 + $0x5] ss:$0 sm:$0xff]  ;;  %v659_v60 = vld [vmem:[#allocation5 + $0x6] ss:$0 sm:$0xff]  ;;  %vm512_vm0 = vcmask 130048   ;;  %s675_s17 = sshll.u32 %s925_s12, 8 }
  0x42   : > { %263 = vperm.xlu1 %770, %v1112_v3   ;;  %239 = vperm.xlu0 %769, %v1112_v3   ;;  %s224_s19 = scalar_lea.vmem [#allocation7], %s650_s27  ;;  %s1150_s24 = scalar_lea.hbm %s1202_s2, %s675_s17 }
  0x43   : > { %s532_s21 = sshll.u32 %s224_s19, 4  ;;  %s516_s12 = scalar_lea.sflag [#allocation4], %s1094_s7  ;;  %s1152_s21 = int_to_ptr.vmem [resolvable:$true] %s532_s21 }
  0x44   : > { %s849_s26 = scalar_lea.vmem %s1152_s21, 256  ;;  %s955_s29 = smov [#allocation7]  }
  0x45   : > { %p850_p1 = scmp.ne.s32.totalorder %s1152_s21, %s849_s26  ;;  %s853_s18 = sshll.u32 %s955_s29, 4  ;;  %s854_s18 = int_to_ptr.vmem [resolvable:$false] %s853_s18 }
  0x46   : > { %772 = vset.pattern.permute.xlu1 %v941_v4  ;;  %771 = vset.pattern.permute.xlu0 %v941_v4  ;;  %v660_v4 = vld [vmem:[#allocation5 + $0x7] ss:$0 sm:$0xff]  ;;  %s855_s30 = scalar_lea.vmem %s854_s18, 512  ;;  %p856_p0 = scmp.lt.s32.totalorder %s1152_s21, %s854_s18 }
  0x47   : > { %280 = vperm.xlu1 %772, %v1112_v3   ;;  %276 = vperm.xlu0 %771, %v1108_v2   ;;  %p851_p8 = pnand %p850_p1, %p1063_p13  ;;  %p857_p2 = scmp.lt.s32.totalorder %s855_s30, %s849_s26 }
  0x49   : > { %p852_p12 = pneg %p851_p8  ;;  %p858_p3 = por %p857_p2, %p856_p0 }
  0x4b   : > { %773 = vset.pattern.permute.xlu1 %v942_v5  ;;  %774 = vset.pattern.permute.xlu0 %v942_v5  ;;  %p859_p5 = pnand %p858_p3, %p852_p12 }
  0x4c   : > { %293 = vperm.xlu1 %773, %v1108_v2   ;;  %297 = vperm.xlu0 %774, %v1112_v3  }
  0x50   : > { %775 = vset.pattern.permute.xlu1 %v943_v6  ;;  %776 = vset.pattern.permute.xlu0 %v944_v7 }
  0x51   : > { %310 = vperm.xlu1 %775, %v1108_v2   ;;  %327 = vperm.xlu0 %776, %v1108_v2  }
  0x55   : > { %314 = vperm.xlu1 %775, %v1112_v3   ;;  %779 = vset.pattern.permute.xlu0 %v945_v8 }
  0x56   : > { %348 = vperm.xlu0 %779, %v1112_v3  }
  0x59   : > { %777 = vset.pattern.permute.xlu1 %v944_v7 }
  0x5a   : > { %331 = vperm.xlu1 %777, %v1112_v3   ;;  %781 = vset.pattern.permute.xlu0 %v946_v9 }
  0x5b   : > { %378 = vperm.xlu0 %781, %v1108_v2  }
  0x5e   : > { %778 = vset.pattern.permute.xlu1 %v945_v8 }
  0x5f   : > { %344 = vperm.xlu1 %778, %v1108_v2   ;;  %784 = vset.pattern.permute.xlu0 %v947_v10 }
  0x60   : > { %399 = vperm.xlu0 %784, %v1112_v3  }
  0x63   : > { %780 = vset.pattern.permute.xlu1 %v948_v11 }
  0x64   : > { %361 = vperm.xlu1 %780, %v1108_v2   ;;  %786 = vset.pattern.permute.xlu0 %v949_v12 }
  0x65   : > { %429 = vperm.xlu0 %786, %v1108_v2  }
  0x68   : > { %365 = vperm.xlu1 %780, %v1112_v3  }
  0x69   : > { %789 = vset.pattern.permute.xlu0 %v950_v13 }
  0x6a   : > { %450 = vperm.xlu0 %789, %v1112_v3  }
  0x6c   : > { %782 = vset.pattern.permute.xlu1 %v946_v9 }
  0x6d   : > { %382 = vperm.xlu1 %782, %v1112_v3  }
  0x6e   : > { %791 = vset.pattern.permute.xlu0 %v951_v14 }
  0x6f   : > { %480 = vperm.xlu0 %791, %v1108_v2  }
  0x71   : > { %783 = vset.pattern.permute.xlu1 %v947_v10  ;;  %v661_v10 = vld [vmem:[#allocation5 + $0x8] ss:$0 sm:$0xff] }
  0x72   : > { %395 = vperm.xlu1 %783, %v1108_v2  }
  0x73   : > { %794 = vset.pattern.permute.xlu0 %v952_v15 }
  0x74   : > { %501 = vperm.xlu0 %794, %v1112_v3  }
  0x76   : > { %785 = vset.pattern.permute.xlu1 %v953_v16 }
  0x77   : > { %412 = vperm.xlu1 %785, %v1108_v2  }
  0x7b   : > { %416 = vperm.xlu1 %785, %v1112_v3  }
  0x7f   : > { %787 = vset.pattern.permute.xlu1 %v949_v12 }
  0x80   : > { %433 = vperm.xlu1 %787, %v1112_v3  }
  0x84   : > { %788 = vset.pattern.permute.xlu1 %v950_v13 }
  0x85   : > { %446 = vperm.xlu1 %788, %v1108_v2  }
  0x89   : > { %790 = vset.pattern.permute.xlu1 %v954_v17 }
  0x8a   : > { %463 = vperm.xlu1 %790, %v1108_v2  }
  0x8e   : > { %467 = vperm.xlu1 %790, %v1112_v3  }
  0x92   : > { %792 = vset.pattern.permute.xlu1 %v951_v14 }
  0x93   : > { %484 = vperm.xlu1 %792, %v1112_v3  }
  0x97   : > { %793 = vset.pattern.permute.xlu1 %v952_v15  ;;  %v662_v15 = vld [vmem:[#allocation5 + $0x9] ss:$0 sm:$0xff] }
  0x98   : > { %497 = vperm.xlu1 %793, %v1108_v2  }
  0xb9   : > { %v260_v18 = vpop.permute.xlu1 %259  ;;  %v235_v25 = vpop.permute.xlu0 %234 }
  0xba   : > { %v270_v39 = vmul.f32 %v654_v32, %v260_v18  ;;  %v246_v40 = vmul.f32 %v653_v33, %v235_v25 }
  0xbc   : > { %v272_v48 = vmax.f32 %v246_v40, %v270_v39 }
  0xbd   : > { %v264_v19 = vpop.permute.xlu1 %263  ;;  %v240_v28 = vpop.permute.xlu0 %239 }
  0xbe   : > { %v271_v36 = vmul.f32 %v654_v32, %v264_v19  ;;  %v247_v37 = vmul.f32 %v653_v33, %v240_v28 }
  0xc0   : > { %v273_v45 = vmax.f32 %v247_v37, %v271_v36 }
  0xc2   : > { %v281_v20 = vpop.permute.xlu1 %280  ;;  %v277_v30 = vpop.permute.xlu0 %276 }
  0xc3   : > { %v288_v42 = vmul.f32 %v655_v34, %v281_v20  ;;  %v287_v43 = vmul.f32 %v655_v34, %v277_v30  ;;  %v665_v34 = vld [vmem:[#allocation5 + $0xc] ss:$0 sm:$0xff] }
  0xc5   : > { %v290_v51 = vmax.f32 %v273_v45, %v288_v42  ;;  %v289_v53 = vmax.f32 %v272_v48, %v287_v43  ;;  %v666_v42 = vld [vmem:[#allocation5 + $0xd] ss:$0 sm:$0xff] }
  0xc7   : > { %v294_v21 = vpop.permute.xlu1 %293  ;;  %v298_v35 = vpop.permute.xlu0 %297 }
  0xc8   : > { %v305_v46 = vmul.f32 %v656_v41, %v298_v35  ;;  %v304_v49 = vmul.f32 %v656_v41, %v294_v21 }
  0xca   : > { %v307_v57 = vmax.f32 %v290_v51, %v305_v46  ;;  %v306_v59 = vmax.f32 %v289_v53, %v304_v49 }
  0xcc   : > { %v311_v22 = vpop.permute.xlu1 %310  ;;  %v328_v44 = vpop.permute.xlu0 %327 }
  0xcd   : > { %v321_v54 = vmul.f32 %v657_v47, %v311_v22  ;;  %v338_v0 = vmul.f32 %v658_v55, %v328_v44 }
  0xcf   : > { %v323_v63 = vmax.f32 %v306_v59, %v321_v54 }
  0xd0   : > { %v315_v23 = vpop.permute.xlu1 %314 }
  0xd1   : > { %v322_v52 = vmul.f32 %v657_v47, %v315_v23  ;;  %v349_v56 = vpop.permute.xlu0 %348  ;;  %v340_v8 = vmax.f32 %v323_v63, %v338_v0  ;;  %v663_v23 = vld [vmem:[#allocation5 + $0xa] ss:$0 sm:$0xff]  ;;  %v668_v47 = vld [vmem:[#allocation5 + $0xf] ss:$0 sm:$0xff] }
  0xd2   : > { %v356_v3 = vmul.f32 %v659_v60, %v349_v56 }
  0xd3   : > { %v324_v62 = vmax.f32 %v307_v57, %v322_v52 }
  0xd5   : > { %v332_v24 = vpop.permute.xlu1 %331 }
  0xd6   : > { %v339_v58 = vmul.f32 %v658_v55, %v332_v24  ;;  %v379_v1 = vpop.permute.xlu0 %378 }
  0xd7   : > { %v389_v18 = vmul.f32 %v661_v10, %v379_v1 }
  0xd8   : > { %v341_v2 = vmax.f32 %v324_v62, %v339_v58 }
  0xda   : > { %v345_v26 = vpop.permute.xlu1 %344  ;;  %v358_v12 = vmax.f32 %v341_v2, %v356_v3 }
  0xdb   : > { %v355_v5 = vmul.f32 %v659_v60, %v345_v26  ;;  %v400_v11 = vpop.permute.xlu0 %399 }
  0xdc   : > { %v407_v22 = vmul.f32 %v662_v15, %v400_v11 }
  0xdd   : > { %v357_v14 = vmax.f32 %v340_v8, %v355_v5 }
  0xdf   : > { %v362_v27 = vpop.permute.xlu1 %361 }
  0xe0   : > { %v372_v9 = vmul.f32 %v660_v4, %v362_v27  ;;  %v430_v19 = vpop.permute.xlu0 %429 }
  0xe2   : > { %v374_v17 = vmax.f32 %v357_v14, %v372_v9 }
  0xe3   : > { %v366_v29 = vpop.permute.xlu1 %365 }
  0xe4   : > { %v373_v6 = vmul.f32 %v660_v4, %v366_v29  ;;  %v391_v26 = vmax.f32 %v374_v17, %v389_v18  ;;  %v664_v29 = vld [vmem:[#allocation5 + $0xb] ss:$0 sm:$0xff] }
  0xe5   : > { %v451_v27 = vpop.permute.xlu0 %450  ;;  %v440_v37 = vmul.f32 %v664_v29, %v430_v19 }
  0xe6   : > { %v375_v16 = vmax.f32 %v358_v12, %v373_v6  ;;  %v458_v41 = vmul.f32 %v665_v34, %v451_v27 }
  0xe8   : > { %v383_v31 = vpop.permute.xlu1 %382 }
  0xe9   : > { %v390_v13 = vmul.f32 %v661_v10, %v383_v31 }
  0xea   : > { %v481_v39 = vpop.permute.xlu0 %480 }
  0xeb   : > { %v392_v21 = vmax.f32 %v375_v16, %v390_v13 }
  0xed   : > { %v396_v38 = vpop.permute.xlu1 %395  ;;  %v409_v30 = vmax.f32 %v392_v21, %v407_v22 }
  0xee   : > { %v406_v24 = vmul.f32 %v662_v15, %v396_v38 }
  0xef   : > { %v502_v48 = vpop.permute.xlu0 %501 }
  0xf0   : > { %v408_v31 = vmax.f32 %v391_v26, %v406_v24  ;;  %v509_v55 = vmul.f32 %v668_v47, %v502_v48 }
  0xf2   : > { %v413_v50 = vpop.permute.xlu1 %412 }
  0xf3   : > { %v423_v28 = vmul.f32 %v663_v23, %v413_v50  ;;  %v667_v50 = vld [vmem:[#allocation5 + $0xe] ss:$0 sm:$0xff] }
  0xf4   : > { %v491_v57 = vmul.f32 %v667_v50, %v481_v39 }
  0xf5   : > { %v425_v36 = vmax.f32 %v408_v31, %v423_v28 }
  0xf6   : > { %v417_v61 = vpop.permute.xlu1 %416 }
  0xf7   : > { %v424_v25 = vmul.f32 %v663_v23, %v417_v61  ;;  %v442_v45 = vmax.f32 %v425_v36, %v440_v37 }
  0xf9   : > { %v426_v35 = vmax.f32 %v409_v30, %v424_v25 }
  0xfb   : > { %v434_v7 = vpop.permute.xlu1 %433 }
  0xfc   : > { %v441_v32 = vmul.f32 %v664_v29, %v434_v7 }
  0xfe   : > { %v443_v40 = vmax.f32 %v426_v35, %v441_v32 }
 0x100   : > { %v447_v20 = vpop.permute.xlu1 %446  ;;  %v460_v49 = vmax.f32 %v443_v40, %v458_v41 }
 0x101   : > { %v457_v44 = vmul.f32 %v665_v34, %v447_v20 }
 0x103   : > { %v459_v51 = vmax.f32 %v442_v45, %v457_v44 }
 0x105   : > { %v464_v33 = vpop.permute.xlu1 %463 }
 0x106   : > { %v474_v46 = vmul.f32 %v666_v42, %v464_v33 }
 0x108   : > { %v476_v56 = vmax.f32 %v459_v51, %v474_v46 }
 0x109   : > { %v468_v43 = vpop.permute.xlu1 %467 }
 0x10a   : > { %v475_v38 = vmul.f32 %v666_v42, %v468_v43  ;;  %v493_v61 = vmax.f32 %v476_v56, %v491_v57 }
 0x10c   : > { %v477_v53 = vmax.f32 %v460_v49, %v475_v38 }
 0x10e   : > { %v485_v52 = vpop.permute.xlu1 %484 }
 0x10f   : > { %v492_v54 = vmul.f32 %v667_v50, %v485_v52 }
 0x111   : > { %v494_v58 = vmax.f32 %v477_v53, %v492_v54 }
 0x113   : > { %v511_v59 = vmax.f32 %v494_v58, %v509_v55  ;;  %v498_v60 = vpop.permute.xlu1 %497 }
 0x114   : > { %v508_v62 = vmul.f32 %v668_v47, %v498_v60 }
 0x115   : > { %514 = vst.msk [vmem:[%s224_s19 + $0x8] sm:$0xff] %vm512_vm0, %v511_v59 }
 0x116   : > { %v510_v63 = vmax.f32 %v493_v61, %v508_v62 }
 0x118   : > { %513 = vst.msk [vmem:[%s224_s19] sm:$0xff] %vm512_vm0, %v510_v63 }
 0x119   : > { %862 = shalt.err (!%p859_p5)
}
 0x11a   : > { %s863_s6 = scalar_lea.hbm %s1150_s24, 256  ;;  %s867_s4 = scalar_lea.hbm %s1202_s2, 512 }
 0x11b   : > { %p864_p7 = scmp.ne.s32.totalorder %s1150_s24, %s863_s6  ;;  %p868_p9 = scmp.lt.s32.totalorder %s1150_s24, %s1202_s2 }
 0x11c   : > { %p869_p11 = scmp.lt.s32.totalorder %s867_s4, %s863_s6 }
 0x11d   : > { %p865_p4 = pnand %p864_p7, %p1063_p13 }
 0x11e   : > { %p870_p10 = por %p869_p11, %p868_p9 }
 0x11f   : > { %p866_p6 = pneg %p865_p4 }
 0x121   : > { %p871_p1 = pnand %p870_p10, %p866_p6 }
 0x123   : > { %874 = shalt.err (!%p871_p1)
}
 0x124   : > { %s956_s22 = smov 128   ;;  %s957_s17 = smov 8  }
 0x125   : > { %682 = dma.vmem_to_hbm [thread:$0]  (%p1063_p13), %s1152_s21, 256, %s1150_s24, %s516_s12, %s956_s22, %s956_s22, %s957_s17  }
 0x126 PF: > { %s547_s19 = sand.u32 1, %s913_s9   ;;  %p1216_p8 = scmp.ne.s32.totalorder %s1208_s20, 0 }
 0x127   : > { %p1217_p12 = scmp.ge.s32.totalorder %s933_s14, 2  ;;  %s548_s28 = scalar_lea.sflag [#allocation4], %s547_s19 }
 0x129   : > { %p693_p0 = pnand %p1217_p12, %p1216_p8 }
 0x12b   : > { %p694_p2 = pneg %p693_p0 }
 0x12d   : > { %908 = dma.done.wait (%p694_p2), %s548_s28, 256  }
 0x12e   : > { %910 = vsyncadd (%p694_p2), %s548_s28, 4294967040  ;;  %s19_s14 = sadd.s32 1, %s933_s14   ;;  %s1218_s9 = smov %s917_s10 }
 0x12f   : > { %p16_p3 = scmp.ge.s32.totalorder %s19_s14, 4   ;;  %s1219_s10 = smov %s921_s11 }
 0x130   : > { %s1220_s11 = smov %s1072_s15  ;;  %s1221_s12 = smov %s929_s13 }
 0x131   : > { %s1222_s13 = smov %s1224_s25  ;;  %18 = sbr.rel (!%p16_p3) target bundleno = 7 (0x7), region = 78 }
 0x136   :  { %553 = vsyncpa [#allocation3], 1 }
 0x137   :  { %555 = vsyncpa [#allocation3 + $0x1], 1 }
 0x138   :  { %556 = vsyncpa [#allocation6], 1 }
 0x139   :  { %557 = vsyncpa [#allocation4], 1 }
 0x13a   :  { %559 = vsyncpa [#allocation4 + $0x1], 1 }

</bundles_post_ra>
